<compile_context>
chip_gen: v7x
topology: tpu7x:2x2x1
jax: 0.10.0
libtpu: 0.0.40
codegen_flags: <defaults>
</compile_context>

<pallas_src>
import functools

import jax
import jax.numpy as jnp
from jax import lax
from jax.experimental import pallas as pl
from jax.experimental.pallas import tpu as pltpu

LANES = 128
SUBLANES = 8
DEFAULT_TILE_ROWS = 2048  # 2048 x 128 f32 = 1 MiB per block


def _add_noise_kernel(seed_ref, x_ref, o_ref, *, a, b, c):
    """out = a*x + b*z + c, z ~ N(0,1) generated in-kernel per element."""
    tile_r, lanes = x_ref.shape

    # Global element index of every lane in this block (counter-based RNG:
    # distinct noise per tile for free, independent of the tiling).
    row = lax.broadcasted_iota(jnp.int32, (tile_r, lanes), 0)
    col = lax.broadcasted_iota(jnp.int32, (tile_r, lanes), 1)
    base_row = pl.program_id(0) * tile_r
    idx = ((base_row + row) * lanes + col).astype(jnp.uint32)

    # Mix in the runtime seed (SMEM scalar).
    key = seed_ref[0].astype(jnp.uint32) * jnp.uint32(0x9E3779B9)

    # "lowbias32" integer hash -> 32 well-mixed uniform bits per element.
    h = idx ^ key
    h = h ^ (h >> 16)
    h = h * jnp.uint32(0x7FEB352D)
    h = h ^ (h >> 15)
    h = h * jnp.uint32(0x846CA68B)
    h = h ^ (h >> 16)

    # Top 24 bits -> uniform in (0, 1), never exactly 0 or 1 (safe for log).
    u24 = (h >> 8).astype(jnp.int32)  # values < 2^24, fits int32
    u = (u24.astype(jnp.float32) + 0.5) * (1.0 / 16777216.0)

    # Standard normal via Abramowitz-Stegun 26.2.23 inverse-CDF approximation.
    p = jnp.minimum(u, 1.0 - u)
    t = jnp.sqrt(-2.0 * jnp.log(p))
    num = 2.515517 + t * (0.802853 + t * 0.010328)
    den = 1.0 + t * (1.432788 + t * (0.189269 + t * 0.001308))
    mag = t - num / den
    z = jnp.where(u < 0.5, -mag, mag)

    x = x_ref[...].astype(jnp.float32)
    o_ref[...] = (a * x + (b * z + c)).astype(o_ref.dtype)


def add_gaussian_noise(x, seed, *, mean, std, fraction,
                       tile_rows=DEFAULT_TILE_ROWS):
    """Apply (1-f)*x + f*(randn*std + mean) to `x` (any shape) via Pallas."""
    orig_shape = x.shape
    orig_dtype = x.dtype

    flat = x.reshape(-1)
    n = flat.shape[0]

    # Lane-dense 2D slab (rows, 128) with rows % 8 == 0.  Only pad (extra HBM
    # pass) when the element count is not already (8*128)-aligned.
    tile_elems = SUBLANES * LANES
    if n % tile_elems != 0:
        padded = ((n + tile_elems - 1) // tile_elems) * tile_elems
        flat = jnp.pad(flat, (0, padded - n))
    rows = flat.shape[0] // LANES
    x2d = flat.reshape(rows, LANES)

    tile_r = min(int(tile_rows), rows)  # both multiples of 8
    grid = (pl.cdiv(rows, tile_r),)

    seed_arr = jnp.asarray([seed], dtype=jnp.int32)

    kernel = functools.partial(
        _add_noise_kernel,
        a=float(1.0 - fraction),          # folded constants:
        b=float(fraction * std),          # out = a*x + b*z + c
        c=float(fraction * mean),
    )

    out2d = pl.pallas_call(
        kernel,
        out_shape=jax.ShapeDtypeStruct((rows, LANES), orig_dtype),
        grid=grid,
        in_specs=[
            pl.BlockSpec(memory_space=pltpu.MemorySpace.SMEM),      # seed
            pl.BlockSpec((tile_r, LANES), lambda i: (i, 0)),        # x tile
        ],
        out_specs=pl.BlockSpec((tile_r, LANES), lambda i: (i, 0)),
        compiler_params=pltpu.CompilerParams(
            dimension_semantics=("parallel",),  # megacore sharding on v7x
        ),
    )(seed_arr, x2d)

    return out2d.reshape(-1)[:n].reshape(orig_shape)


if __name__ == "__main__":
    # Module "parameters" (floats from __init__), set deterministically.
    MEAN = 0.5
    STD = 0.25
    FRACTION = 0.3

    key = jax.random.PRNGKey(0)
    x = jax.random.normal(key, (2, 4, 16, 16), dtype=jnp.float32)  # NCHW

    out = add_gaussian_noise(x, seed=0, mean=MEAN, std=STD, fraction=FRACTION)
    out = jax.block_until_ready(out)

    assert out.shape == x.shape and out.dtype == x.dtype

    # Sanity check: output deviates from the pure-signal term by
    # fraction * noise with noise ~ N(mean, std).
    residual = out - (1.0 - FRACTION) * x
    implied_noise = residual / FRACTION
    m = float(jnp.mean(implied_noise))
    s = float(jnp.std(implied_noise))
    assert abs(m - MEAN) < 0.1, f"noise mean off: {m}"
    assert abs(s - STD) < 0.1, f"noise std off: {s}"

    # TODO(synk): exact torch.randn bit-stream is not reproducible; noise is
    # i.i.d. N(mean, std) from an in-kernel counter-based generator instead.

    print("KERNEL_OK")
</pallas_src>

<mosaic_0001>
module attributes {stable_mosaic.version = 11 : i64} {
  func.func @_add_noise_kernel(%arg0: i32, %arg1: memref<1xi32, #tpu.memory_space<smem>>, %arg2: memref<16x128xf32, #tpu.memory_space<vmem>>, %arg3: memref<16x128xf32, #tpu.memory_space<vmem>>) attributes {dimension_semantics = [#tpu.dimension_semantics<parallel>], iteration_bounds = array<i64: 1>, scalar_prefetch = 0 : i64, scratch_operands = 0 : i64, tpu.core_type = #tpu.core_type<tc>, window_params = [{transform_indices = @transform_0, window_bounds = array<i64: 1>}, {transform_indices = @transform_1, window_bounds = array<i64: 16, 128>}, {transform_indices = @transform_2, window_bounds = array<i64: 16, 128>}]} {
    %0 = tpu.iota {dimensions = array<i32: 0>} : vector<16x128xi32>
    %1 = tpu.iota {dimensions = array<i32: 1>} : vector<16x128xi32>
    %c16_i32 = arith.constant 16 : i32
    %2 = arith.muli %arg0, %c16_i32 : i32
    %3 = vector.broadcast %2 : i32 to vector<16x128xi32>
    %4 = arith.addi %3, %0 : vector<16x128xi32>
    %c128_i32 = arith.constant 128 : i32
    %5 = vector.broadcast %c128_i32 : i32 to vector<16x128xi32>
    %6 = arith.muli %4, %5 : vector<16x128xi32>
    %7 = arith.addi %6, %1 : vector<16x128xi32>
    %c0 = arith.constant 0 : index
    %8 = memref.load %arg1[%c0] : memref<1xi32, #tpu.memory_space<smem>>
    %c-1640531527_i32 = arith.constant -1640531527 : i32
    %9 = arith.muli %8, %c-1640531527_i32 : i32
    %10 = vector.broadcast %9 : i32 to vector<16x128xi32>
    %11 = arith.xori %7, %10 : vector<16x128xi32>
    %c16_i32_0 = arith.constant 16 : i32
    %12 = vector.broadcast %c16_i32_0 : i32 to vector<16x128xi32>
    %13 = arith.shrui %11, %12 : vector<16x128xi32>
    %14 = arith.xori %11, %13 : vector<16x128xi32>
    %c2146121005_i32 = arith.constant 2146121005 : i32
    %15 = vector.broadcast %c2146121005_i32 : i32 to vector<16x128xi32>
    %16 = arith.muli %14, %15 : vector<16x128xi32>
    %c15_i32 = arith.constant 15 : i32
    %17 = vector.broadcast %c15_i32 : i32 to vector<16x128xi32>
    %18 = arith.shrui %16, %17 : vector<16x128xi32>
    %19 = arith.xori %16, %18 : vector<16x128xi32>
    %c-2073254261_i32 = arith.constant -2073254261 : i32
    %20 = vector.broadcast %c-2073254261_i32 : i32 to vector<16x128xi32>
    %21 = arith.muli %19, %20 : vector<16x128xi32>
    %c16_i32_1 = arith.constant 16 : i32
    %22 = vector.broadcast %c16_i32_1 : i32 to vector<16x128xi32>
    %23 = arith.shrui %21, %22 : vector<16x128xi32>
    %24 = arith.xori %21, %23 : vector<16x128xi32>
    %c8_i32 = arith.constant 8 : i32
    %25 = vector.broadcast %c8_i32 : i32 to vector<16x128xi32>
    %26 = arith.shrui %24, %25 : vector<16x128xi32>
    %27 = arith.sitofp %26 : vector<16x128xi32> to vector<16x128xf32>
    %cst = arith.constant 5.000000e-01 : f32
    %28 = vector.broadcast %cst : f32 to vector<16x128xf32>
    %29 = arith.addf %27, %28 : vector<16x128xf32>
    %cst_2 = arith.constant 5.96046448E-8 : f32
    %30 = vector.broadcast %cst_2 : f32 to vector<16x128xf32>
    %31 = arith.mulf %29, %30 : vector<16x128xf32>
    %cst_3 = arith.constant 1.000000e+00 : f32
    %32 = vector.broadcast %cst_3 : f32 to vector<16x128xf32>
    %33 = arith.subf %32, %31 : vector<16x128xf32>
    %34 = arith.minimumf %31, %33 : vector<16x128xf32>
    %35 = math.log %34 : vector<16x128xf32>
    %cst_4 = arith.constant -2.000000e+00 : f32
    %36 = vector.broadcast %cst_4 : f32 to vector<16x128xf32>
    %37 = arith.mulf %36, %35 : vector<16x128xf32>
    %38 = math.sqrt %37 : vector<16x128xf32>
    %cst_5 = arith.constant 1.032800e-02 : f32
    %39 = vector.broadcast %cst_5 : f32 to vector<16x128xf32>
    %40 = arith.mulf %38, %39 : vector<16x128xf32>
    %cst_6 = arith.constant 0.802852988 : f32
    %41 = vector.broadcast %cst_6 : f32 to vector<16x128xf32>
    %42 = arith.addf %41, %40 : vector<16x128xf32>
    %43 = arith.mulf %38, %42 : vector<16x128xf32>
    %cst_7 = arith.constant 2.515517 : f32
    %44 = vector.broadcast %cst_7 : f32 to vector<16x128xf32>
    %45 = arith.addf %44, %43 : vector<16x128xf32>
    %cst_8 = arith.constant 1.308000e-03 : f32
    %46 = vector.broadcast %cst_8 : f32 to vector<16x128xf32>
    %47 = arith.mulf %38, %46 : vector<16x128xf32>
    %cst_9 = arith.constant 1.892690e-01 : f32
    %48 = vector.broadcast %cst_9 : f32 to vector<16x128xf32>
    %49 = arith.addf %48, %47 : vector<16x128xf32>
    %50 = arith.mulf %38, %49 : vector<16x128xf32>
    %cst_10 = arith.constant 1.43278801 : f32
    %51 = vector.broadcast %cst_10 : f32 to vector<16x128xf32>
    %52 = arith.addf %51, %50 : vector<16x128xf32>
    %53 = arith.mulf %38, %52 : vector<16x128xf32>
    %cst_11 = arith.constant 1.000000e+00 : f32
    %54 = vector.broadcast %cst_11 : f32 to vector<16x128xf32>
    %55 = arith.addf %54, %53 : vector<16x128xf32>
    %56 = arith.divf %45, %55 : vector<16x128xf32>
    %57 = arith.subf %38, %56 : vector<16x128xf32>
    %cst_12 = arith.constant 5.000000e-01 : f32
    %58 = vector.broadcast %cst_12 : f32 to vector<16x128xf32>
    %59 = arith.cmpf olt, %31, %58 : vector<16x128xf32>
    %cst_13 = arith.constant 0.000000e+00 : f32
    %60 = vector.broadcast %cst_13 : f32 to vector<16x128xf32>
    %61 = arith.subf %60, %57 : vector<16x128xf32>
    %62 = arith.select %59, %61, %57 : vector<16x128xi1>, vector<16x128xf32>
    %c0_14 = arith.constant 0 : index
    %c0_15 = arith.constant 0 : index
    %63 = vector.load %arg2[%c0_14, %c0_15] : memref<16x128xf32, #tpu.memory_space<vmem>>, vector<16x128xf32>
    %cst_16 = arith.constant 0.699999988 : f32
    %64 = vector.broadcast %cst_16 : f32 to vector<16x128xf32>
    %65 = arith.mulf %64, %63 : vector<16x128xf32>
    %cst_17 = arith.constant 7.500000e-02 : f32
    %66 = vector.broadcast %cst_17 : f32 to vector<16x128xf32>
    %67 = arith.mulf %66, %62 : vector<16x128xf32>
    %cst_18 = arith.constant 1.500000e-01 : f32
    %68 = vector.broadcast %cst_18 : f32 to vector<16x128xf32>
    %69 = arith.addf %67, %68 : vector<16x128xf32>
    %70 = arith.addf %65, %69 : vector<16x128xf32>
    %c0_19 = arith.constant 0 : index
    %c0_20 = arith.constant 0 : index
    %71 = vector.load %arg3[%c0_19, %c0_20] : memref<16x128xf32, #tpu.memory_space<vmem>>, vector<16x128xf32>
    tpu.vector_store %arg3[%c0_19, %c0_20], %70 {strides = array<i32>} : memref<16x128xf32, #tpu.memory_space<vmem>>, vector<16x128xf32>,
    return
  }
  func.func @transform_0(%arg0: i32) -> i32 {
    %c0_i32 = arith.constant 0 : i32
    %c0_i32_0 = arith.constant 0 : i32
    return %c0_i32 : i32
  }
  func.func @transform_1(%arg0: i32) -> (i32, i32) {
    %c0_i32 = arith.constant 0 : i32
    %c0_i32_0 = arith.constant 0 : i32
    return %arg0, %c0_i32 : i32, i32
  }
  func.func @transform_2(%arg0: i32) -> (i32, i32) {
    %c0_i32 = arith.constant 0 : i32
    %c0_i32_0 = arith.constant 0 : i32
    return %arg0, %c0_i32 : i32, i32
  }
}

</mosaic_0001>

<bundles_post_ra>
// kernel: tpu_custom_call.1
= control target key start
LH: loop header
LB: loop body
LE: loop exit
PB: predicated region body
PF: predicated region fallthrough
CT: control target
= control target key end

     0   :  { %8 = vsyncpa [#allocation4], 0  ;;  %s280_s0 = inlined_call_operand.<no memory space> [shape: s32[1], index: 0, kind: input, shape index: {}]   ;;  %s281_s1 = inlined_call_operand.hbm [shape: f32[16,128], index: 1, kind: input, shape index: {}]   ;;  %s282_s2 = inlined_call_operand.hbm [shape: f32[16,128], index: 2, kind: output, shape index: {}]  }
   0x1   :  { %9 = vsyncpa [#allocation5], 0  ;;  %s218_s9 = smov [#allocation3]   ;;  %s170_s13 = scalar_lea.hbm %s281_s1, 256 }
   0x2   :  { %s17_s10 = sshll.u32 %s218_s9, 4  ;;  %p171_p0 = scmp.ne.s32.totalorder %s281_s1, %s170_s13  ;;  %s18_s10 = int_to_ptr.vmem [resolvable:$true] %s17_s10 }
   0x3   :  { %p174_p1 = scmp.lt.u32.totalorder %s170_s13, %s281_s1 }
   0x5   :  { %p176_p2 = pnand %p174_p1, %p171_p0 }
   0x7   :  { %179 = shalt.err (!%p176_p2)
}
   0x8   :  { %s180_s18 = scalar_lea.vmem %s18_s10, 256  ;;  %p185_p4 = scmp.lt.s32.totalorder %s18_s10, %s18_s10 }
   0x9   :  { %p181_p3 = scmp.ne.s32.totalorder %s18_s10, %s180_s18  ;;  %p186_p5 = scmp.lt.s32.totalorder %s180_s18, %s180_s18 }
   0xb   :  { %p187_p6 = por %p186_p5, %p185_p4 }
   0xd   :  { %p188_p7 = pnand %p187_p6, %p181_p3 }
   0xf   :  { %191 = shalt.err (!%p188_p7)
}
  0x10   :  { %s219_s19 = smov 128   ;;  %s220_s20 = smov 8  }
  0x11   :  { %23 = dma.hbm_to_vmem [thread:$0]  %s281_s1, 256, %s18_s10, [#allocation4], %s219_s19, %s219_s19, %s220_s20  }
  0x12   :  { %214 = dma.done.wait [#allocation4], 256  }
  0x13   :  { %215 = vsyncadd [#allocation4], 4294967040  ;;  %v27_v0 = vlaneseq  ;;  %s41_s25 = smul.u32 2654435769, %s280_s0  ;;  %s221_s0 = smov [#allocation6]  }
  0x14   :  { %s142_s1 = sshll.u32 %s221_s0, 4  ;;  %s143_s1 = int_to_ptr.vmem [resolvable:$true] %s142_s1 }
  0x15   :  { %v28_v1 = vshrl.u32 %v27_v0, 7  ;;  %v31_v2 = vand.u32 127, %v27_v0  ;;  %v42_v5 = vstv %s41_s25  ;;  %s192_s26 = scalar_lea.vmem %s143_s1, 256  ;;  %p197_p9 = scmp.lt.s32.totalorder %s143_s1, %s143_s1 }
  0x16   :  { %p193_p8 = scmp.ne.s32.totalorder %s143_s1, %s192_s26  ;;  %p198_p10 = scmp.lt.s32.totalorder %s192_s26, %s192_s26 }
  0x17   :  { %v36_v3 = vmul.u32 128, %v28_v1  ;;  %v29_v4 = vadd.s32 8, %v28_v1 }
  0x18   :  { %p199_p11 = por %p198_p10, %p197_p9 }
  0x19   :  { %v38_v6 = vadd.s32 %v36_v3, %v31_v2  ;;  %v37_v7 = vmul.u32 128, %v29_v4 }
  0x1a   :  { %p200_p12 = pnand %p199_p11, %p193_p8 }
  0x1b   :  { %v43_v8 = vxor.u32 %v42_v5, %v38_v6  ;;  %v39_v9 = vadd.s32 %v37_v7, %v31_v2 }
  0x1d   :  { %v45_v10 = vshrl.u32 %v43_v8, 16  ;;  %v44_v11 = vxor.u32 %v42_v5, %v39_v9 }
  0x1f   :  { %v47_v12 = vxor.u32 %v45_v10, %v43_v8  ;;  %v46_v13 = vshrl.u32 %v44_v11, 16 }
  0x21   :  { %v49_v14 = vmul.u32 2146121005, %v47_v12  ;;  %v48_v15 = vxor.u32 %v46_v13, %v44_v11 }
  0x23   :  { %v51_v16 = vshrl.u32 %v49_v14, 15  ;;  %v50_v17 = vmul.u32 2146121005, %v48_v15 }
  0x25   :  { %v53_v18 = vxor.u32 %v51_v16, %v49_v14  ;;  %v52_v19 = vshrl.u32 %v50_v17, 15 }
  0x27   :  { %v55_v20 = vmul.u32 2221713035, %v53_v18  ;;  %v54_v21 = vxor.u32 %v52_v19, %v50_v17  ;;  %v125_v17 = vld [vmem:[#allocation3] sm:$0xff] }
  0x29   :  { %v57_v22 = vshrl.u32 %v55_v20, 16  ;;  %v56_v23 = vmul.u32 2221713035, %v54_v21 }
  0x2b   :  { %v59_v24 = vxor.u32 %v57_v22, %v55_v20  ;;  %v58_v25 = vshrl.u32 %v56_v23, 16  ;;  %v127_v20 = vmul.f32 0.7, %v125_v17 }
  0x2d   :  { %v61_v26 = vshrl.u32 %v59_v24, 8  ;;  %v60_v27 = vxor.u32 %v58_v25, %v56_v23  ;;  %v126_v23 = vld [vmem:[#allocation3 + $0x8] sm:$0xff] }
  0x2f   :  { %v63_v28 = vcvt.s32.f32 %v61_v26  ;;  %v62_v29 = vshrl.u32 %v60_v27, 8  ;;  %v128_v26 = vmul.f32 0.7, %v126_v23 }
  0x31   :  { %v65_v30 = vadd.f32 0.5, %v63_v28  ;;  %v64_v31 = vcvt.s32.f32 %v62_v29 }
  0x33   :  { %v255_v32 = vmul.f32 5.9604645e-08, %v65_v30  ;;  %v66_v33 = vadd.f32 0.5, %v64_v31 }
  0x35   :  { %v69_v34 = vsub.f32 1.0, %v255_v32  ;;  %v258_v35 = vmul.f32 5.9604645e-08, %v66_v33  ;;  %vm119_vm4 = vcmp.lt.f32.partialorder %v255_v32, 0.5 }
  0x37   :  { %v71_v36 = vmin.f32 %v255_v32, %v69_v34  ;;  %v70_v37 = vsub.f32 1.0, %v258_v35  ;;  %vm120_vm5 = vcmp.lt.f32.partialorder %v258_v35, 0.5 }
  0x39   :  { %158 = vlog2.f32 %v71_v36  ;;  %v72_v38 = vmin.f32 %v258_v35, %v70_v37 }
  0x3b   :  { %160 = vlog2.f32 %v72_v38 }
  0x43   :  { %v159_v39 = vpop.eup %158 }
  0x44   :  { %v74_v40 = vmul.f32 0.6931472, %v159_v39 }
  0x45   :  { %v161_v41 = vpop.eup %160 }
  0x46   :  { %v77_v42 = vmul.f32 -2.0, %v74_v40  ;;  %v76_v43 = vmul.f32 0.6931472, %v161_v41 }
  0x48   :  { %162 = vrsqrt.f32 %v77_v42  ;;  %v78_v44 = vmul.f32 -2.0, %v76_v43  ;;  %vm81_vm0 = vcmp.eq.f32.partialorder %v77_v42, inf  ;;  %v84_v46 = vand.u32 2147483648, %v77_v42 }
  0x49   :  { %vm83_vm1 = vcmp.eq.f32.partialorder %v77_v42, 0.0 }
  0x4a   :  { %164 = vrsqrt.f32 %v78_v44  ;;  %vm88_vm2 = vcmp.eq.f32.partialorder %v78_v44, inf  ;;  %v91_v50 = vand.u32 2147483648, %v78_v44  ;;  %vm90_vm3 = vcmp.eq.f32.partialorder %v78_v44, 0.0 }
  0x52   :  { %v163_v45 = vpop.eup %162 }
  0x53   :  { %v80_v47 = vmul.f32 %v163_v45, %v77_v42 }
  0x54   :  { %v165_v48 = vpop.eup %164 }
  0x55   :  { %v82_v49 = vsel %vm81_vm0, %v77_v42, %v80_v47  ;;  %v87_v52 = vmul.f32 %v165_v48, %v78_v44 }
  0x56   :  { %v85_v51 = vsel %vm83_vm1, %v84_v46, %v82_v49 }
  0x57   :  { %v101_v53 = vmul.f32 0.001308, %v85_v51  ;;  %v89_v54 = vsel %vm88_vm2, %v78_v44, %v87_v52  ;;  %v93_v61 = vmul.f32 0.010328, %v85_v51 }
  0x58   :  { %v92_v56 = vsel %vm90_vm3, %v91_v50, %v89_v54 }
  0x59   :  { %v103_v55 = vadd.f32 0.189269, %v101_v53  ;;  %v102_v57 = vmul.f32 0.001308, %v92_v56  ;;  %v94_v2 = vmul.f32 0.010328, %v92_v56 }
  0x5a   :  { %v95_v3 = vadd.f32 0.802853, %v93_v61 }
  0x5b   :  { %v105_v58 = vmul.f32 %v103_v55, %v85_v51  ;;  %v104_v59 = vadd.f32 0.189269, %v102_v57  ;;  %v96_v6 = vadd.f32 0.802853, %v94_v2 }
  0x5c   :  { %v97_v7 = vmul.f32 %v95_v3, %v85_v51 }
  0x5d   :  { %v107_v60 = vadd.f32 1.432788, %v105_v58  ;;  %v106_v62 = vmul.f32 %v104_v59, %v92_v56  ;;  %v98_v8 = vmul.f32 %v96_v6, %v92_v56 }
  0x5e   :  { %v99_v9 = vadd.f32 2.515517, %v97_v7 }
  0x5f   :  { %v109_v63 = vmul.f32 %v107_v60, %v85_v51  ;;  %v108_v0 = vadd.f32 1.432788, %v106_v62  ;;  %v100_v11 = vadd.f32 2.515517, %v98_v8 }
  0x61   :  { %v111_v1 = vadd.f32 1.0, %v109_v63  ;;  %v110_v4 = vmul.f32 %v108_v0, %v92_v56 }
  0x63   :  { %166 = vrcp.f32 %v111_v1  ;;  %v112_v5 = vadd.f32 1.0, %v110_v4 }
  0x65   :  { %168 = vrcp.f32 %v112_v5 }
  0x6d   :  { %v167_v10 = vpop.eup %166 }
  0x6e   :  { %v114_v12 = vmul.f32 %v167_v10, %v99_v9 }
  0x6f   :  { %v169_v13 = vpop.eup %168 }
  0x70   :  { %v117_v14 = vsub.f32 %v85_v51, %v114_v12  ;;  %v116_v15 = vmul.f32 %v169_v13, %v100_v11 }
  0x72   :  { %v121_v16 = vsub.f32 0.0, %v117_v14  ;;  %v118_v18 = vsub.f32 %v92_v56, %v116_v15 }
  0x74   :  { %v123_v19 = vsel %vm119_vm4, %v121_v16, %v117_v14  ;;  %v122_v22 = vsub.f32 0.0, %v118_v18 }
  0x75   :  { %v129_v21 = vmul.f32 0.075, %v123_v19 }
  0x76   :  { %v124_v25 = vsel %vm120_vm5, %v122_v22, %v118_v18 }
  0x77   :  { %v131_v24 = vadd.f32 0.15, %v129_v21  ;;  %v130_v27 = vmul.f32 0.075, %v124_v25 }
  0x79   :  { %v133_v28 = vadd.f32 %v131_v24, %v127_v20  ;;  %v132_v29 = vadd.f32 0.15, %v130_v27 }
  0x7b   :  { %135 = vst [vmem:[#allocation6] sm:$0xff] %v133_v28  ;;  %v134_v30 = vadd.f32 %v132_v29, %v128_v26 }
  0x7d   :  { %136 = vst [vmem:[#allocation6 + $0x8] sm:$0xff] %v134_v30 }
  0x7e   :  { %203 = shalt.err (!%p200_p12)
}
  0x7f   :  { %s204_s29 = scalar_lea.hbm %s282_s2, 256 }
  0x80   :  { %p205_p13 = scmp.ne.s32.totalorder %s282_s2, %s204_s29  ;;  %p208_p0 = scmp.lt.u32.totalorder %s204_s29, %s282_s2 }
  0x82   :  { %p210_p1 = pnand %p208_p0, %p205_p13 }
  0x84   :  { %213 = shalt.err (!%p210_p1)
}
  0x85   :  { %148 = dma.vmem_to_hbm [thread:$0]  %s143_s1, 256, %s282_s2, [#allocation5], %s219_s19, %s219_s19, %s220_s20  }
  0x86   :  { %216 = dma.done.wait [#allocation5], 256  }
  0x87   :  { %217 = vsyncadd [#allocation5], 4294967040 }
  0x88   :  { %152 = vsyncpa [#allocation4], 1 }
  0x89   :  { %153 = vsyncpa [#allocation5], 1 }

</bundles_post_ra>
